<compile_context>
chip_gen: v7x
topology: tpu7x:2x2x1
jax: 0.10.0
libtpu: 0.0.40
codegen_flags: <defaults>
</compile_context>

<pallas_src>
import functools

import jax
import jax.numpy as jnp
import numpy as np
from jax.experimental import pallas as pl
from jax.experimental.pallas import tpu as pltpu

LANE = 128


# ------------------------------ Pallas kernel ------------------------------ #

def _adaptive_loss_kernel(w_ref, pred_ref, target_ref, out_ref,
                          focal_acc, dice_acc, inter_acc, psum_acc, tsum_acc,
                          *, alpha, gamma, smooth, batch, n_per_sample):
    """One grid step processes a (TR, L) tile of one sample.

    Grid = (B, R // TR); sample index outer, reduction (r) axis last.
    Scratch accumulators persist across grid steps (sequential grid, both
    axes "arbitrary"):
      focal_acc (1,1): running sum of focal loss over every element
      dice_acc  (1,1): running sum of per-sample dice coefficients
      inter/psum/tsum (1,1): per-sample partial sums, reset at r == 0
    """
    b = pl.program_id(0)
    r = pl.program_id(1)
    nb = pl.num_programs(0)
    nr = pl.num_programs(1)

    @pl.when((b == 0) & (r == 0))
    def _init_global():
        focal_acc[...] = jnp.zeros_like(focal_acc)
        dice_acc[...] = jnp.zeros_like(dice_acc)

    @pl.when(r == 0)
    def _init_sample():
        inter_acc[...] = jnp.zeros_like(inter_acc)
        psum_acc[...] = jnp.zeros_like(psum_acc)
        tsum_acc[...] = jnp.zeros_like(tsum_acc)

    # Native-dtype tile (e.g. bf16) cast to f32 on the VPU, per tile.
    x = pred_ref[...].astype(jnp.float32)       # (TR, L)
    t = target_ref[...].astype(jnp.float32)     # (TR, L)

    # ---- shared transcendentals: 2 EUP pushes / element instead of 4 ----
    e = jnp.exp(-jnp.abs(x))                                    # exp  (#1)
    # Numerically stable BCE-with-logits. (log1p(e) would be marginally more
    # accurate for large |x|, but log(1+e) lowers everywhere and the
    # difference is negligible where focal is non-tiny.)
    ce = jnp.maximum(x, 0.0) - x * t + jnp.log(1.0 + e)         # log  (#2)
    inv = 1.0 / (1.0 + e)
    p = jnp.where(x >= 0.0, inv, e * inv)       # sigmoid(x), reuses e
    # Binary-mask shortcut: pt = exp(-ce) = p^t (1-p)^(1-t) = where(t, p, 1-p).
    # TODO(synk): fall back to pt = exp(-ce) if soft (non-binary) targets occur.
    pt = jnp.where(t > 0.5, p, 1.0 - p)
    om = 1.0 - pt
    mod = om * om if float(gamma) == 2.0 else jnp.power(om, gamma)
    focal = alpha * mod * ce

    def _sum11(v):                               # (TR, L) -> (1, 1)
        s = jnp.sum(v, axis=1, keepdims=True)    # lane reduce
        return jnp.sum(s, axis=0, keepdims=True) # sublane reduce

    focal_acc[...] += _sum11(focal)
    inter_acc[...] += _sum11(p * t)
    psum_acc[...] += _sum11(p)
    tsum_acc[...] += _sum11(t)

    # ---- per-sample dice finalize (last reduction step of this sample) ----
    @pl.when(r == nr - 1)
    def _finish_sample():
        dice_b = ((2.0 * inter_acc[...] + smooth)
                  / (psum_acc[...] + tsum_acc[...] + smooth))
        dice_acc[...] += dice_b

    # ---- epilogue: AdaptiveLossWeights exp-weighted combine (runs once) ----
    @pl.when((b == nb - 1) & (r == nr - 1))
    def _finish():
        one = jnp.ones((1, 1), jnp.float32)
        focal_mean = focal_acc[...] * (1.0 / (batch * n_per_sample))
        dice_loss_v = 1.0 - dice_acc[...] * (1.0 / batch)
        ew_f = jnp.exp(w_ref[0] * one)           # scalar -> (1,1), vector exp
        ew_d = jnp.exp(w_ref[1] * one)
        ew_i = jnp.exp(w_ref[2] * one)
        iou = w_ref[3] * one
        out_ref[...] = (ew_f * focal_mean + ew_d * dice_loss_v
                        + ew_i * iou).astype(out_ref.dtype)


# ------------------------------ Pallas wrapper ------------------------------ #

def _choose_tiling(n, max_block_elems):
    """View each sample (n elements) as (R, L) and tile blocks as (TR, L)."""
    if n % LANE != 0:
        # TODO(synk): non-128-multiple sample sizes take a single unaligned
        # lane-row per sample (correct, but lane-masked / lower occupancy).
        return 1, n, 1
    L = LANE
    R = n // L
    cap = max(1, max_block_elems // L)
    TR = R                                  # full axis is always a legal block
    t = min(R, cap)
    while t >= 1:
        if R % t == 0 and (t % 8 == 0 or t == R):
            TR = t
            break
        t -= 1
    return R, L, TR


def adaptive_total_loss(pred, target, iou_loss, focal_weight, dice_weight,
                        iou_weight, *, alpha=0.25, gamma=2.0, smooth=1e-5,
                        max_block_elems=256 * 1024):
    """Fused focal_loss + dice_loss + AdaptiveLossWeights.forward -> scalar."""
    B = pred.shape[0]
    n = int(np.prod(pred.shape[1:]))
    R, L, TR = _choose_tiling(n, max_block_elems)

    # Keep native dtype: no wrapper up-cast (HBM traffic stays at input width).
    pred3 = pred.reshape(B, R, L)
    target3 = target.reshape(B, R, L)

    scalars = jnp.stack([
        jnp.asarray(focal_weight, jnp.float32),
        jnp.asarray(dice_weight, jnp.float32),
        jnp.asarray(iou_weight, jnp.float32),
        jnp.asarray(iou_loss, jnp.float32),
    ])                                              # (4,) -> SMEM

    grid = (B, R // TR)

    kernel = functools.partial(_adaptive_loss_kernel, alpha=float(alpha),
                               gamma=float(gamma), smooth=float(smooth),
                               batch=B, n_per_sample=n)

    # Rough VMEM budget: double-buffered inputs + ~10 f32 temporaries per tile,
    # with 2x safety; floored at the default scoped limit, capped at 32 MiB.
    blk = TR * L
    est = 2 * (2 * 2 * blk * pred3.dtype.itemsize
               + 2 * 2 * blk * target3.dtype.itemsize
               + 10 * blk * 4) + (1 << 20)
    vmem_budget = int(min(32 * 1024 * 1024, max(16 * 1024 * 1024, est)))

    out = pl.pallas_call(
        kernel,
        out_shape=jax.ShapeDtypeStruct((1, 1), jnp.float32),
        grid=grid,
        in_specs=[
            pl.BlockSpec(memory_space=pltpu.MemorySpace.SMEM),     # 4 scalars
            pl.BlockSpec((None, TR, L), lambda b, r: (b, r, 0)),   # pred tile
            pl.BlockSpec((None, TR, L), lambda b, r: (b, r, 0)),   # target tile
        ],
        out_specs=pl.BlockSpec((1, 1), lambda b, r: (0, 0)),
        scratch_shapes=[
            pltpu.VMEM((1, 1), jnp.float32),   # focal_acc
            pltpu.VMEM((1, 1), jnp.float32),   # dice_acc
            pltpu.VMEM((1, 1), jnp.float32),   # inter_acc
            pltpu.VMEM((1, 1), jnp.float32),   # psum_acc
            pltpu.VMEM((1, 1), jnp.float32),   # tsum_acc
        ],
        compiler_params=pltpu.CompilerParams(
            # Both axes "arbitrary": the single output and the cross-sample
            # accumulators are carried sequentially across the whole grid.
            # TODO(synk): per-core partial sums would let v7x use both TCs.
            dimension_semantics=("arbitrary", "arbitrary"),
            vmem_limit_bytes=vmem_budget,
        ),
    )(scalars, pred3, target3)
    return out[0, 0]


# --------------------------- pure-JAX reference ----------------------------- #

def _ref_total(pred, target, iou_loss, wf, wd, wi, *,
               alpha=0.25, gamma=2.0, smooth=1e-5):
    x = pred.astype(jnp.float32)
    t = target.astype(jnp.float32)
    # focal_loss (reduction='mean')
    ce = jnp.maximum(x, 0.0) - x * t + jnp.log1p(jnp.exp(-jnp.abs(x)))
    pt = jnp.exp(-ce)
    focal = jnp.mean(alpha * (1.0 - pt) ** gamma * ce)
    # dice_loss
    p = jax.nn.sigmoid(x)
    B = x.shape[0]
    pf = p.reshape(B, -1)
    tf = t.reshape(B, -1)
    inter = jnp.sum(pf * tf, axis=1)
    dice = (2.0 * inter + smooth) / (jnp.sum(pf, axis=1) + jnp.sum(tf, axis=1) + smooth)
    dloss = 1.0 - jnp.mean(dice)
    # AdaptiveLossWeights.forward
    return jnp.exp(wf) * focal + jnp.exp(wd) * dloss + jnp.exp(wi) * iou_loss


# ----------------------------------- main ------------------------------------ #

if __name__ == "__main__":
    B, C, H, W = 2, 2, 32, 32            # mask logits / binary masks

    key = jax.random.PRNGKey(0)
    k_pred, k_tgt, k_iou, k_w = jax.random.split(key, 4)
    pred = jax.random.normal(k_pred, (B, C, H, W), jnp.float32).astype(jnp.bfloat16)
    target = (jax.random.uniform(k_tgt, (B, C, H, W)) > 0.5).astype(jnp.bfloat16)
    iou_loss = jnp.abs(jax.random.normal(k_iou, (), jnp.float32)) * 0.5

    # nn.Parameter init is 1.0; perturb slightly so the three weights differ.
    w = 1.0 + 0.05 * jax.random.normal(k_w, (3,), jnp.float32)
    focal_w, dice_w, iou_w = w[0], w[1], w[2]

    ref = _ref_total(pred, target, iou_loss, focal_w, dice_w, iou_w)

    # 1) Default tiling.
    total = adaptive_total_loss(pred, target, iou_loss, focal_w, dice_w, iou_w)
    total = jax.block_until_ready(total)
    np.testing.assert_allclose(np.asarray(total), np.asarray(ref),
                               rtol=1e-4, atol=1e-5)

    # 2) Tiny block cap -> multi-step reduction grid; exercises the scratch
    #    accumulator / pl.when init + finalize path.
    total_tiled = adaptive_total_loss(pred, target, iou_loss, focal_w, dice_w,
                                      iou_w, max_block_elems=8 * LANE)
    total_tiled = jax.block_until_ready(total_tiled)
    np.testing.assert_allclose(np.asarray(total_tiled), np.asarray(ref),
                               rtol=1e-4, atol=1e-5)

    assert total.shape == ()
    print("KERNEL_OK")
</pallas_src>

<mosaic_0001>
module attributes {stable_mosaic.version = 11 : i64} {
  func.func @_adaptive_loss_kernel(%arg0: i32, %arg1: i32, %arg2: memref<4xf32, #tpu.memory_space<smem>>, %arg3: memref<1x16x128xbf16, #tpu.memory_space<vmem>>, %arg4: memref<1x16x128xbf16, #tpu.memory_space<vmem>>, %arg5: memref<1x1xf32, #tpu.memory_space<vmem>>, %arg6: memref<1x1xf32, #tpu.memory_space<vmem>>, %arg7: memref<1x1xf32, #tpu.memory_space<vmem>>, %arg8: memref<1x1xf32, #tpu.memory_space<vmem>>, %arg9: memref<1x1xf32, #tpu.memory_space<vmem>>, %arg10: memref<1x1xf32, #tpu.memory_space<vmem>>) attributes {dimension_semantics = [#tpu.dimension_semantics<arbitrary>, #tpu.dimension_semantics<arbitrary>], iteration_bounds = array<i64: 2, 1>, scalar_prefetch = 0 : i64, scratch_operands = 5 : i64, tpu.core_type = #tpu.core_type<tc>, window_params = [{transform_indices = @transform_0, window_bounds = array<i64: 4>}, {transform_indices = @transform_1, window_bounds = array<i64: 1, 16, 128>}, {transform_indices = @transform_2, window_bounds = array<i64: 1, 16, 128>}, {pipeline_mode = #tpu.pipeline_mode<synchronous>, transform_indices = @transform_3, window_bounds = array<i64: 1, 1>}]} {
    %c0_i32 = arith.constant 0 : i32
    %0 = arith.cmpi eq, %arg0, %c0_i32 : i32
    %c0_i32_0 = arith.constant 0 : i32
    %1 = arith.cmpi eq, %arg1, %c0_i32_0 : i32
    %2 = arith.andi %0, %1 : i1
    %3 = arith.extui %2 : i1 to i32
    %c0_i32_1 = arith.constant 0 : i32
    %4 = arith.cmpi ne, %3, %c0_i32_1 : i32
    scf.if %4 {
      %cst_46 = arith.constant 0.000000e+00 : f32
      %82 = vector.broadcast %cst_46 : f32 to vector<1x1xf32>
      %c0_47 = arith.constant 0 : index
      %c0_48 = arith.constant 0 : index
      %83 = vector.load %arg6[%c0_47, %c0_48] : memref<1x1xf32, #tpu.memory_space<vmem>>, vector<1x1xf32>
      tpu.vector_store %arg6[%c0_47, %c0_48], %82 {strides = array<i32>} : memref<1x1xf32, #tpu.memory_space<vmem>>, vector<1x1xf32>,
      %cst_49 = arith.constant 0.000000e+00 : f32
      %84 = vector.broadcast %cst_49 : f32 to vector<1x1xf32>
      %c0_50 = arith.constant 0 : index
      %c0_51 = arith.constant 0 : index
      %85 = vector.load %arg7[%c0_50, %c0_51] : memref<1x1xf32, #tpu.memory_space<vmem>>, vector<1x1xf32>
      tpu.vector_store %arg7[%c0_50, %c0_51], %84 {strides = array<i32>} : memref<1x1xf32, #tpu.memory_space<vmem>>, vector<1x1xf32>,
    } else {
    }
    %c0_i32_2 = arith.constant 0 : i32
    %5 = arith.cmpi eq, %arg1, %c0_i32_2 : i32
    %6 = arith.extui %5 : i1 to i32
    %c0_i32_3 = arith.constant 0 : i32
    %7 = arith.cmpi ne, %6, %c0_i32_3 : i32
    scf.if %7 {
      %cst_46 = arith.constant 0.000000e+00 : f32
      %82 = vector.broadcast %cst_46 : f32 to vector<1x1xf32>
      %c0_47 = arith.constant 0 : index
      %c0_48 = arith.constant 0 : index
      %83 = vector.load %arg8[%c0_47, %c0_48] : memref<1x1xf32, #tpu.memory_space<vmem>>, vector<1x1xf32>
      tpu.vector_store %arg8[%c0_47, %c0_48], %82 {strides = array<i32>} : memref<1x1xf32, #tpu.memory_space<vmem>>, vector<1x1xf32>,
      %cst_49 = arith.constant 0.000000e+00 : f32
      %84 = vector.broadcast %cst_49 : f32 to vector<1x1xf32>
      %c0_50 = arith.constant 0 : index
      %c0_51 = arith.constant 0 : index
      %85 = vector.load %arg9[%c0_50, %c0_51] : memref<1x1xf32, #tpu.memory_space<vmem>>, vector<1x1xf32>
      tpu.vector_store %arg9[%c0_50, %c0_51], %84 {strides = array<i32>} : memref<1x1xf32, #tpu.memory_space<vmem>>, vector<1x1xf32>,
      %cst_52 = arith.constant 0.000000e+00 : f32
      %86 = vector.broadcast %cst_52 : f32 to vector<1x1xf32>
      %c0_53 = arith.constant 0 : index
      %c0_54 = arith.constant 0 : index
      %87 = vector.load %arg10[%c0_53, %c0_54] : memref<1x1xf32, #tpu.memory_space<vmem>>, vector<1x1xf32>
      tpu.vector_store %arg10[%c0_53, %c0_54], %86 {strides = array<i32>} : memref<1x1xf32, #tpu.memory_space<vmem>>, vector<1x1xf32>,
    } else {
    }
    %c0 = arith.constant 0 : index
    %c0_4 = arith.constant 0 : index
    %c0_5 = arith.constant 0 : index
    %8 = vector.load %arg3[%c0, %c0_4, %c0_5] : memref<1x16x128xbf16, #tpu.memory_space<vmem>>, vector<1x16x128xbf16>
    %9 = vector.shape_cast %8 : vector<1x16x128xbf16> to vector<16x128xbf16>
    %10 = arith.extf %9 : vector<16x128xbf16> to vector<16x128xf32>
    %c0_6 = arith.constant 0 : index
    %c0_7 = arith.constant 0 : index
    %c0_8 = arith.constant 0 : index
    %11 = vector.load %arg4[%c0_6, %c0_7, %c0_8] : memref<1x16x128xbf16, #tpu.memory_space<vmem>>, vector<1x16x128xbf16>
    %12 = vector.shape_cast %11 : vector<1x16x128xbf16> to vector<16x128xbf16>
    %13 = arith.extf %12 : vector<16x128xbf16> to vector<16x128xf32>
    %14 = math.absf %10 : vector<16x128xf32>
    %cst = arith.constant 0.000000e+00 : f32
    %15 = vector.broadcast %cst : f32 to vector<16x128xf32>
    %16 = arith.subf %15, %14 : vector<16x128xf32>
    %17 = math.exp %16 : vector<16x128xf32>
    %cst_9 = arith.constant 0.000000e+00 : f32
    %18 = vector.broadcast %cst_9 : f32 to vector<16x128xf32>
    %19 = arith.maximumf %10, %18 : vector<16x128xf32>
    %20 = arith.mulf %10, %13 : vector<16x128xf32>
    %21 = arith.subf %19, %20 : vector<16x128xf32>
    %cst_10 = arith.constant 1.000000e+00 : f32
    %22 = vector.broadcast %cst_10 : f32 to vector<16x128xf32>
    %23 = arith.addf %22, %17 : vector<16x128xf32>
    %24 = math.log %23 : vector<16x128xf32>
    %25 = arith.addf %21, %24 : vector<16x128xf32>
    %cst_11 = arith.constant 1.000000e+00 : f32
    %26 = vector.broadcast %cst_11 : f32 to vector<16x128xf32>
    %27 = arith.addf %26, %17 : vector<16x128xf32>
    %cst_12 = arith.constant 1.000000e+00 : f32
    %28 = vector.broadcast %cst_12 : f32 to vector<16x128xf32>
    %29 = arith.divf %28, %27 : vector<16x128xf32>
    %cst_13 = arith.constant 0.000000e+00 : f32
    %30 = vector.broadcast %cst_13 : f32 to vector<16x128xf32>
    %31 = arith.cmpf oge, %10, %30 : vector<16x128xf32>
    %32 = arith.mulf %17, %29 : vector<16x128xf32>
    %33 = arith.select %31, %29, %32 : vector<16x128xi1>, vector<16x128xf32>
    %cst_14 = arith.constant 5.000000e-01 : f32
    %34 = vector.broadcast %cst_14 : f32 to vector<16x128xf32>
    %35 = arith.cmpf ogt, %13, %34 : vector<16x128xf32>
    %cst_15 = arith.constant 1.000000e+00 : f32
    %36 = vector.broadcast %cst_15 : f32 to vector<16x128xf32>
    %37 = arith.subf %36, %33 : vector<16x128xf32>
    %38 = arith.select %35, %33, %37 : vector<16x128xi1>, vector<16x128xf32>
    %cst_16 = arith.constant 1.000000e+00 : f32
    %39 = vector.broadcast %cst_16 : f32 to vector<16x128xf32>
    %40 = arith.subf %39, %38 : vector<16x128xf32>
    %41 = arith.mulf %40, %40 : vector<16x128xf32>
    %cst_17 = arith.constant 2.500000e-01 : f32
    %42 = vector.broadcast %cst_17 : f32 to vector<16x128xf32>
    %43 = arith.mulf %42, %41 : vector<16x128xf32>
    %44 = arith.mulf %43, %25 : vector<16x128xf32>
    %c0_18 = arith.constant 0 : index
    %c0_19 = arith.constant 0 : index
    %45 = vector.load %arg6[%c0_18, %c0_19] : memref<1x1xf32, #tpu.memory_space<vmem>>, vector<1x1xf32>
    %cst_20 = arith.constant dense<0.000000e+00> : vector<16xf32>
    %46 = vector.multi_reduction <add>, %44, %cst_20 [1] : vector<16x128xf32> to vector<16xf32>
    %47 = vector.shape_cast %46 : vector<16xf32> to vector<16x1xf32>
    %cst_21 = arith.constant dense<0.000000e+00> : vector<1xf32>
    %48 = vector.multi_reduction <add>, %47, %cst_21 [0] : vector<16x1xf32> to vector<1xf32>
    %49 = vector.shape_cast %48 : vector<1xf32> to vector<1x1xf32>
    %50 = arith.addf %45, %49 : vector<1x1xf32>
    %c0_22 = arith.constant 0 : index
    %c0_23 = arith.constant 0 : index
    %51 = vector.load %arg6[%c0_22, %c0_23] : memref<1x1xf32, #tpu.memory_space<vmem>>, vector<1x1xf32>
    tpu.vector_store %arg6[%c0_22, %c0_23], %50 {strides = array<i32>} : memref<1x1xf32, #tpu.memory_space<vmem>>, vector<1x1xf32>,
    %c0_24 = arith.constant 0 : index
    %c0_25 = arith.constant 0 : index
    %52 = vector.load %arg8[%c0_24, %c0_25] : memref<1x1xf32, #tpu.memory_space<vmem>>, vector<1x1xf32>
    %53 = arith.mulf %33, %13 : vector<16x128xf32>
    %cst_26 = arith.constant dense<0.000000e+00> : vector<16xf32>
    %54 = vector.multi_reduction <add>, %53, %cst_26 [1] : vector<16x128xf32> to vector<16xf32>
    %55 = vector.shape_cast %54 : vector<16xf32> to vector<16x1xf32>
    %cst_27 = arith.constant dense<0.000000e+00> : vector<1xf32>
    %56 = vector.multi_reduction <add>, %55, %cst_27 [0] : vector<16x1xf32> to vector<1xf32>
    %57 = vector.shape_cast %56 : vector<1xf32> to vector<1x1xf32>
    %58 = arith.addf %52, %57 : vector<1x1xf32>
    %c0_28 = arith.constant 0 : index
    %c0_29 = arith.constant 0 : index
    %59 = vector.load %arg8[%c0_28, %c0_29] : memref<1x1xf32, #tpu.memory_space<vmem>>, vector<1x1xf32>
    tpu.vector_store %arg8[%c0_28, %c0_29], %58 {strides = array<i32>} : memref<1x1xf32, #tpu.memory_space<vmem>>, vector<1x1xf32>,
    %c0_30 = arith.constant 0 : index
    %c0_31 = arith.constant 0 : index
    %60 = vector.load %arg9[%c0_30, %c0_31] : memref<1x1xf32, #tpu.memory_space<vmem>>, vector<1x1xf32>
    %cst_32 = arith.constant dense<0.000000e+00> : vector<16xf32>
    %61 = vector.multi_reduction <add>, %33, %cst_32 [1] : vector<16x128xf32> to vector<16xf32>
    %62 = vector.shape_cast %61 : vector<16xf32> to vector<16x1xf32>
    %cst_33 = arith.constant dense<0.000000e+00> : vector<1xf32>
    %63 = vector.multi_reduction <add>, %62, %cst_33 [0] : vector<16x1xf32> to vector<1xf32>
    %64 = vector.shape_cast %63 : vector<1xf32> to vector<1x1xf32>
    %65 = arith.addf %60, %64 : vector<1x1xf32>
    %c0_34 = arith.constant 0 : index
    %c0_35 = arith.constant 0 : index
    %66 = vector.load %arg9[%c0_34, %c0_35] : memref<1x1xf32, #tpu.memory_space<vmem>>, vector<1x1xf32>
    tpu.vector_store %arg9[%c0_34, %c0_35], %65 {strides = array<i32>} : memref<1x1xf32, #tpu.memory_space<vmem>>, vector<1x1xf32>,
    %c0_36 = arith.constant 0 : index
    %c0_37 = arith.constant 0 : index
    %67 = vector.load %arg10[%c0_36, %c0_37] : memref<1x1xf32, #tpu.memory_space<vmem>>, vector<1x1xf32>
    %cst_38 = arith.constant dense<0.000000e+00> : vector<16xf32>
    %68 = vector.multi_reduction <add>, %13, %cst_38 [1] : vector<16x128xf32> to vector<16xf32>
    %69 = vector.shape_cast %68 : vector<16xf32> to vector<16x1xf32>
    %cst_39 = arith.constant dense<0.000000e+00> : vector<1xf32>
    %70 = vector.multi_reduction <add>, %69, %cst_39 [0] : vector<16x1xf32> to vector<1xf32>
    %71 = vector.shape_cast %70 : vector<1xf32> to vector<1x1xf32>
    %72 = arith.addf %67, %71 : vector<1x1xf32>
    %c0_40 = arith.constant 0 : index
    %c0_41 = arith.constant 0 : index
    %73 = vector.load %arg10[%c0_40, %c0_41] : memref<1x1xf32, #tpu.memory_space<vmem>>, vector<1x1xf32>
    tpu.vector_store %arg10[%c0_40, %c0_41], %72 {strides = array<i32>} : memref<1x1xf32, #tpu.memory_space<vmem>>, vector<1x1xf32>,
    %c0_i32_42 = arith.constant 0 : i32
    %74 = arith.cmpi eq, %arg1, %c0_i32_42 : i32
    %75 = arith.extui %74 : i1 to i32
    %c0_i32_43 = arith.constant 0 : i32
    %76 = arith.cmpi ne, %75, %c0_i32_43 : i32
    scf.if %76 {
      %c0_46 = arith.constant 0 : index
      %c0_47 = arith.constant 0 : index
      %82 = vector.load %arg8[%c0_46, %c0_47] : memref<1x1xf32, #tpu.memory_space<vmem>>, vector<1x1xf32>
      %cst_48 = arith.constant 2.000000e+00 : f32
      %83 = vector.broadcast %cst_48 : f32 to vector<1x1xf32>
      %84 = arith.mulf %83, %82 : vector<1x1xf32>
      %cst_49 = arith.constant 9.99999974E-6 : f32
      %85 = vector.broadcast %cst_49 : f32 to vector<1x1xf32>
      %86 = arith.addf %84, %85 : vector<1x1xf32>
      %c0_50 = arith.constant 0 : index
      %c0_51 = arith.constant 0 : index
      %87 = vector.load %arg9[%c0_50, %c0_51] : memref<1x1xf32, #tpu.memory_space<vmem>>, vector<1x1xf32>
      %c0_52 = arith.constant 0 : index
      %c0_53 = arith.constant 0 : index
      %88 = vector.load %arg10[%c0_52, %c0_53] : memref<1x1xf32, #tpu.memory_space<vmem>>, vector<1x1xf32>
      %89 = arith.addf %87, %88 : vector<1x1xf32>
      %cst_54 = arith.constant 9.99999974E-6 : f32
      %90 = vector.broadcast %cst_54 : f32 to vector<1x1xf32>
      %91 = arith.addf %89, %90 : vector<1x1xf32>
      %92 = arith.divf %86, %91 : vector<1x1xf32>
      %c0_55 = arith.constant 0 : index
      %c0_56 = arith.constant 0 : index
      %93 = vector.load %arg7[%c0_55, %c0_56] : memref<1x1xf32, #tpu.memory_space<vmem>>, vector<1x1xf32>
      %94 = arith.addf %93, %92 : vector<1x1xf32>
      %c0_57 = arith.constant 0 : index
      %c0_58 = arith.constant 0 : index
      %95 = vector.load %arg7[%c0_57, %c0_58] : memref<1x1xf32, #tpu.memory_space<vmem>>, vector<1x1xf32>
      tpu.vector_store %arg7[%c0_57, %c0_58], %94 {strides = array<i32>} : memref<1x1xf32, #tpu.memory_space<vmem>>, vector<1x1xf32>,
    } else {
    }
    %c1_i32 = arith.constant 1 : i32
    %77 = arith.cmpi eq, %arg0, %c1_i32 : i32
    %c0_i32_44 = arith.constant 0 : i32
    %78 = arith.cmpi eq, %arg1, %c0_i32_44 : i32
    %79 = arith.andi %77, %78 : i1
    %80 = arith.extui %79 : i1 to i32
    %c0_i32_45 = arith.constant 0 : i32
    %81 = arith.cmpi ne, %80, %c0_i32_45 : i32
    scf.if %81 {
      %cst_46 = arith.constant 1.000000e+00 : f32
      %82 = vector.broadcast %cst_46 : f32 to vector<1x1xf32>
      %c0_47 = arith.constant 0 : index
      %c0_48 = arith.constant 0 : index
      %83 = vector.load %arg6[%c0_47, %c0_48] : memref<1x1xf32, #tpu.memory_space<vmem>>, vector<1x1xf32>
      %cst_49 = arith.constant 2.44140625E-4 : f32
      %84 = vector.broadcast %cst_49 : f32 to vector<1x1xf32>
      %85 = arith.mulf %83, %84 : vector<1x1xf32>
      %c0_50 = arith.constant 0 : index
      %c0_51 = arith.constant 0 : index
      %86 = vector.load %arg7[%c0_50, %c0_51] : memref<1x1xf32, #tpu.memory_space<vmem>>, vector<1x1xf32>
      %cst_52 = arith.constant 5.000000e-01 : f32
      %87 = vector.broadcast %cst_52 : f32 to vector<1x1xf32>
      %88 = arith.mulf %86, %87 : vector<1x1xf32>
      %cst_53 = arith.constant 1.000000e+00 : f32
      %89 = vector.broadcast %cst_53 : f32 to vector<1x1xf32>
      %90 = arith.subf %89, %88 : vector<1x1xf32>
      %c0_54 = arith.constant 0 : index
      %91 = memref.load %arg2[%c0_54] : memref<4xf32, #tpu.memory_space<smem>>
      %92 = vector.broadcast %91 : f32 to vector<1x1xf32>
      %93 = arith.mulf %92, %82 : vector<1x1xf32>
      %94 = math.exp %93 : vector<1x1xf32>
      %c1 = arith.constant 1 : index
      %95 = memref.load %arg2[%c1] : memref<4xf32, #tpu.memory_space<smem>>
      %96 = vector.broadcast %95 : f32 to vector<1x1xf32>
      %97 = arith.mulf %96, %82 : vector<1x1xf32>
      %98 = math.exp %97 : vector<1x1xf32>
      %c2 = arith.constant 2 : index
      %99 = memref.load %arg2[%c2] : memref<4xf32, #tpu.memory_space<smem>>
      %100 = vector.broadcast %99 : f32 to vector<1x1xf32>
      %101 = arith.mulf %100, %82 : vector<1x1xf32>
      %102 = math.exp %101 : vector<1x1xf32>
      %c3 = arith.constant 3 : index
      %103 = memref.load %arg2[%c3] : memref<4xf32, #tpu.memory_space<smem>>
      %104 = vector.broadcast %103 : f32 to vector<1x1xf32>
      %105 = arith.mulf %104, %82 : vector<1x1xf32>
      %106 = arith.mulf %94, %85 : vector<1x1xf32>
      %107 = arith.mulf %98, %90 : vector<1x1xf32>
      %108 = arith.addf %106, %107 : vector<1x1xf32>
      %109 = arith.mulf %102, %105 : vector<1x1xf32>
      %110 = arith.addf %108, %109 : vector<1x1xf32>
      %c0_55 = arith.constant 0 : index
      %c0_56 = arith.constant 0 : index
      %111 = vector.load %arg5[%c0_55, %c0_56] : memref<1x1xf32, #tpu.memory_space<vmem>>, vector<1x1xf32>
      tpu.vector_store %arg5[%c0_55, %c0_56], %110 {strides = array<i32>} : memref<1x1xf32, #tpu.memory_space<vmem>>, vector<1x1xf32>,
    } else {
    }
    return
  }
  func.func @transform_0(%arg0: i32, %arg1: i32) -> i32 {
    %c0_i32 = arith.constant 0 : i32
    %c0_i32_0 = arith.constant 0 : i32
    return %c0_i32 : i32
  }
  func.func @transform_1(%arg0: i32, %arg1: i32) -> (i32, i32, i32) {
    %c0_i32 = arith.constant 0 : i32
    %c0_i32_0 = arith.constant 0 : i32
    return %arg0, %arg1, %c0_i32 : i32, i32, i32
  }
  func.func @transform_2(%arg0: i32, %arg1: i32) -> (i32, i32, i32) {
    %c0_i32 = arith.constant 0 : i32
    %c0_i32_0 = arith.constant 0 : i32
    return %arg0, %arg1, %c0_i32 : i32, i32, i32
  }
  func.func @transform_3(%arg0: i32, %arg1: i32) -> (i32, i32) {
    %c0_i32 = arith.constant 0 : i32
    %c0_i32_0 = arith.constant 0 : i32
    %c0_i32_1 = arith.constant 0 : i32
    return %c0_i32, %c0_i32_0 : i32, i32
  }
}

</mosaic_0001>

<bundles_post_ra>
// kernel: tpu_custom_call.1
= control target key start
LH: loop header
LB: loop body
LE: loop exit
PB: predicated region body
PF: predicated region fallthrough
CT: control target
= control target key end

     0   :  { %8 = vsyncpa [#allocation10], 0  ;;  %s1104_s0 = inlined_call_operand.hbm [shape: f32[4], index: 0, kind: input, shape index: {}]   ;;  %s1105_s1 = inlined_call_operand.hbm [shape: bf16[2,16,128], index: 1, kind: input, shape index: {}]   ;;  %s1106_s2 = inlined_call_operand.hbm [shape: bf16[2,16,128], index: 2, kind: input, shape index: {}]   ;;  %s1107_s3 = inlined_call_operand.hbm [shape: f32[1,1], index: 3, kind: output, shape index: {}]  }
   0x1   :  { %9 = vsyncpa [#allocation8], 0 }
   0x2   :  { %11 = vsyncpa [#allocation8 + $0x1], 0 }
   0x3   :  { %12 = vsyncpa [#allocation13], 0 }
   0x4   :  { %14 = vsyncpa [#allocation13 + $0x1], 0 }
   0x5   :  { %15 = vsyncpa [#allocation9], 0  ;;  %s860_s12 = smov 0   ;;  %s862_s13 = smov 0  }
   0x6   :  { %s864_s14 = smov 0   ;;  %s866_s15 = smov 0  }
   0x7   :  { %s868_s16 = smov 0   ;;  %s870_s17 = smov 0  }
   0x8 LB: > { %s532_s18 = sadd.s32 4294967295, %s830_s17   ;;  %s63_s19 = sadd.s32 1, %s818_s14  ;;  %s830_s17 = sphi %s870_s17, %s21_s17   ;;  %s826_s16 = sphi %s868_s16, %s1122_s16   ;;  %s822_s15 = sphi %s866_s15, %s1121_s15   ;;  %s818_s14 = sphi %s864_s14, %s1120_s14   ;;  %s814_s13 = sphi %s862_s13, %s1119_s13   ;;  %s810_s12 = sphi %s860_s12, %s1118_s12  }
   0x9   : > { %p70_p0 = scmp.ne.s32.totalorder %s818_s14, %s814_s13  ;;  %p71_p1 = scmp.eq.s32.totalorder %s830_s17, 0 }
   0xa   : > { %p76_p2 = scmp.ne.s32.totalorder %s814_s13, %s810_s12  ;;  %p896_p3 = scmp.eq.s32.totalorder %s532_s18, 0 }
   0xb   : > { %p72_p4 = por %p71_p1, %p70_p0  ;;  %p533_p5 = scmp.ge.s32.totalorder %s830_s17, 1 }
   0xc   : > { %s1111_s20 = scalar_select %p896_p3, 1, 0 }
   0xd   : > { %p903_p6 = por %p896_p3, %p76_p2  ;;  %p136_p7 = scmp.lt.s32.totalorder %s830_s17, 3 }
   0xe   : > { %p591_p9 = scmp.lt.s32.totalorder %s830_s17, 2  ;;  %s33_s24 = sadd.s32 1, %s826_s16 }
   0xf   : > { %s1112_s21 = scalar_select %p903_p6, 1, 0 }
  0x10   : > { %p908_p8 = pnand %p533_p5, %p136_p7  ;;  %p915_p11 = pnand %p591_p9, %p72_p4 }
  0x11   : > { %p35_p13 = scmp.ge.s32.totalorder %s33_s24, 2  ;;  %s923_s25 = sand.u32 1, %s818_s14  }
  0x12   : > { %p579_p10 = pneg %p908_p8  ;;  %s669_s28 = scalar_lea.hbm %s1104_s0, 16 }
  0x13   : > { %p670_p0 = scmp.ne.s32.totalorder %s1104_s0, %s669_s28  ;;  %p676_p5 = scmp.lt.u32.totalorder %s669_s28, %s1104_s0 }
  0x14   : > { %p580_p12 = pnand %p579_p10, %p896_p3 }
  0x16   : > { %p671_p1 = pneg %p580_p12 }
  0x18   : > { %p672_p2 = pnand %p671_p1, %p670_p0 }
  0x1a   : > { %p673_p4 = pneg %p672_p2 }
  0x1c   : > { %p678_p7 = pnand %p676_p5, %p673_p4 }
  0x1e   : > { %681 = shalt.err (!%p678_p7)
}
  0x1f   : > { %s832_s6 = smov [#allocation7]   ;;  %s1124_s24 = smov (%p35_p13, %s33_s24), 0 }
  0x20   : > { %582 = dma.hbm_to_smem (!%p580_p12), %s1104_s0, 16, %s832_s6, [#allocation10]  }
  0x21   : > { %s536_s9 = sshll.u32 %s923_s25, 3  ;;  %s555_s10 = sshll.u32 %s826_s16, 7 }
  0x22   : > { %s58_s11 = ssub.s32 %s826_s16, %s1124_s24  ;;  %s948_s27 = scalar_lea.hbm %s1105_s1, %s555_s10 }
  0x23   : > { %p61_p9 = scmp.eq.s32.totalorder %s58_s11, 0  ;;  %s162_s28 = scalar_lea.vmem [#allocation11], %s536_s9 }
  0x24   : > { %s171_s29 = sshll.u32 %s162_s28, 4  ;;  %s159_s4 = scalar_lea.sflag [#allocation8], %s923_s25  ;;  %s957_s29 = int_to_ptr.vmem [resolvable:$true] %s171_s29 }
  0x25   : > { %s955_s30 = scalar_select %p61_p9, %s818_s14, %s63_s19  }
  0x26   : > { %s682_s5 = scalar_lea.hbm %s948_s27, 128  ;;  %p684_p12 = pneg %p915_p11 }
  0x27   : > { %p683_p10 = scmp.ne.s32.totalorder %s948_s27, %s682_s5  ;;  %s687_s8 = scalar_lea.hbm %s1105_s1, 256 }
  0x28   : > { %p688_p1 = scmp.lt.u32.totalorder %s948_s27, %s1105_s1  ;;  %p689_p2 = scmp.lt.u32.totalorder %s687_s8, %s682_s5 }
  0x29   : > { %p685_p13 = pnand %p684_p12, %p683_p10  ;;  %p691_p5 = scmp.lt.u32.totalorder %s682_s5, %s948_s27 }
  0x2a   : > { %p690_p4 = por %p689_p2, %p688_p1 }
  0x2b   : > { %p686_p0 = pneg %p685_p13 }
  0x2c   : > { %p692_p7 = por %p691_p5, %p690_p4 }
  0x2e   : > { %p693_p9 = pnand %p692_p7, %p686_p0 }
  0x30   : > { %696 = shalt.err (!%p693_p9)
}
  0x31   : > { %s697_s19 = scalar_lea.vmem %s957_s29, 128  ;;  %s833_s26 = smov [#allocation11]  }
  0x32   : > { %p698_p10 = scmp.ne.s32.totalorder %s957_s29, %s697_s19  ;;  %s702_s28 = sshll.u32 %s833_s26, 4  ;;  %s703_s28 = int_to_ptr.vmem [resolvable:$false] %s702_s28 }
  0x33   : > { %s704_s6 = scalar_lea.vmem %s703_s28, 256  ;;  %p705_p3 = scmp.lt.s32.totalorder %s957_s29, %s703_s28 }
  0x34   : > { %p700_p13 = pnand %p698_p10, %p684_p12  ;;  %p706_p1 = scmp.lt.s32.totalorder %s704_s6, %s697_s19 }
  0x36   : > { %p701_p6 = pneg %p700_p13  ;;  %p707_p2 = por %p706_p1, %p705_p3 }
  0x38   : > { %p708_p4 = pnand %p707_p2, %p701_p6 }
  0x3a   : > { %711 = shalt.err (!%p708_p4)
}
  0x3b   : > { %s834_s5 = smov 64   ;;  %s835_s7 = smov 4  }
  0x3c   : > { %586 = dma.hbm_to_vmem [thread:$0]  (!%p915_p11), %s948_s27, 128, %s957_s29, %s159_s4, %s834_s5, %s834_s5, %s835_s7  }
  0x3d   : > { %s995_s12 = scalar_lea.hbm %s1106_s2, %s555_s10  ;;  %s185_s19 = scalar_lea.vmem [#allocation12], %s536_s9 }
  0x3e   : > { %s194_s26 = sshll.u32 %s185_s19, 4  ;;  %s182_s28 = scalar_lea.sflag [#allocation13], %s923_s25  ;;  %s999_s26 = int_to_ptr.vmem [resolvable:$true] %s194_s26 }
  0x3f   : > { %s712_s6 = scalar_lea.hbm %s995_s12, 128  ;;  %s717_s10 = scalar_lea.hbm %s1106_s2, 256 }
  0x40   : > { %p713_p3 = scmp.ne.s32.totalorder %s995_s12, %s712_s6  ;;  %p718_p5 = scmp.lt.u32.totalorder %s995_s12, %s1106_s2 }
  0x41   : > { %p719_p7 = scmp.lt.u32.totalorder %s717_s10, %s712_s6  ;;  %p721_p10 = scmp.lt.u32.totalorder %s712_s6, %s995_s12 }
  0x42   : > { %p715_p6 = pnand %p713_p3, %p684_p12 }
  0x43   : > { %p720_p9 = por %p719_p7, %p718_p5 }
  0x44   : > { %p716_p0 = pneg %p715_p6 }
  0x45   : > { %p722_p13 = por %p721_p10, %p720_p9 }
  0x47   : > { %p723_p1 = pnand %p722_p13, %p716_p0 }
  0x49   : > { %726 = shalt.err (!%p723_p1)
}
  0x4a   : > { %s727_s9 = scalar_lea.vmem %s999_s26, 128  ;;  %s836_s11 = smov [#allocation12]  }
  0x4b   : > { %p728_p2 = scmp.ne.s32.totalorder %s999_s26, %s727_s9  ;;  %s732_s19 = sshll.u32 %s836_s11, 4  ;;  %s733_s19 = int_to_ptr.vmem [resolvable:$false] %s732_s19 }
  0x4c   : > { %s734_s27 = scalar_lea.vmem %s733_s19, 256  ;;  %p735_p6 = scmp.lt.s32.totalorder %s999_s26, %s733_s19 }
  0x4d   : > { %p730_p4 = pnand %p728_p2, %p684_p12  ;;  %p736_p5 = scmp.lt.s32.totalorder %s734_s27, %s727_s9 }
  0x4f   : > { %p731_p3 = pneg %p730_p4  ;;  %p737_p7 = por %p736_p5, %p735_p6 }
  0x51   : > { %p738_p9 = pnand %p737_p7, %p731_p3 }
  0x53   : > { %741 = shalt.err (!%p738_p9)
}
  0x54   : > { %589 = dma.hbm_to_vmem [thread:$0]  (!%p915_p11), %s995_s12, 128, %s999_s26, %s182_s28, %s834_s5, %s834_s5, %s835_s7  }
  0x55   : > { %206 = sbr.rel (%p908_p8) target bundleno = 379 (0x17b), region = 32  ;;  %p1115_p12 = scmp.ne.s32.totalorder (!%p908_p8), %s1111_s20, 0 }
  0x5c   : > { %793 = dma.done.wait (%p1115_p12), [#allocation10], 16  }
  0x5d   : > { %795 = vsyncadd (%p1115_p12), [#allocation10], 4294967280  ;;  %s212_s23 = sand.u32 1, %s814_s13   ;;  %p1116_p0 = scmp.ne.s32.totalorder %s1112_s21, 0 }
  0x5e   : > { %s544_s6 = sshll.u32 %s212_s23, 3  ;;  %s213_s29 = scalar_lea.sflag [#allocation8], %s212_s23 }
  0x5f   : > { %s216_s10 = scalar_lea.vmem [#allocation11], %s544_s6 }
  0x60   : > { %797 = dma.done.wait (%p1116_p0), %s213_s29, 128  }
  0x61   : > { %799 = vsyncadd (%p1116_p0), %s213_s29, 4294967168  ;;  %s222_s22 = scalar_lea.sflag [#allocation13], %s212_s23  ;;  %s225_s25 = scalar_lea.vmem [#allocation12], %s544_s6 }
  0x62   : > { %801 = dma.done.wait (%p1116_p0), %s222_s22, 128  }
  0x63   : > { %803 = vsyncadd (%p1116_p0), %s222_s22, 4294967168 }
  0x64   : > { %230 = sfence }
  0x65   : > { %p251_p8 = scmp.eq.s32.totalorder %s822_s15, 0 }
  0x66   : > { %vm257_vm0 = vcmask (%p251_p8), 0   ;;  %v837_v0 = vmov (%p251_p8), 0.0  }
  0x67   : > { %256 = sbr.rel (!%p251_p8) target bundleno = 110 (0x6e), region = 48  ;;  %258 = vst.msk [vmem:[#allocation2] sm:$0x1] (%p251_p8), %vm257_vm0, %v837_v0  ;;  %259 = vst.msk [vmem:[#allocation3] sm:$0x1] (%p251_p8), %vm257_vm0, %v837_v0 }
  0x6e PF: > { %v564_v1 = vld [vmem:[%s225_s25] sm:$0xff]   ;;  %v560_v2 = vld [vmem:[%s216_s10] sm:$0xff]   ;;  %vm263_vm1 = vcmask 0   ;;  %v838_v17 = vmov 0.0   ;;  %p395_p11 = scmp.eq.s32.totalorder %s822_s15, 1 }
  0x6f   : > { %v565_v3 = vunpack.c.l.bf16 %v564_v1  ;;  %v561_v4 = vunpack.c.l.bf16 %v560_v2  ;;  %v562_v5 = vunpack.c.h.bf16 %v560_v2  ;;  %v566_v6 = vunpack.c.h.bf16 %v564_v1  ;;  %266 = vst.msk [vmem:[#allocation6] sm:$0x1] %vm263_vm1, %v838_v17  ;;  %264 = vst.msk [vmem:[#allocation4] sm:$0x1] %vm263_vm1, %v838_v17  ;;  %s405_s20 = sld [smem:[#allocation7]] (%p395_p11)  ;;  %s548_s21 = sld [smem:[#allocation7 + $0x1]] (%p395_p11) }
  0x70   : > { %265 = vst.msk [vmem:[#allocation5] sm:$0x1] %vm263_vm1, %v838_v17  ;;  %s549_s5 = sld [smem:[#allocation7 + $0x2]] (%p395_p11)  ;;  %s550_s7 = sld [smem:[#allocation7 + $0x3]] (%p395_p11) }
  0x71   : > { %367 = vadd.xlane.f32.xlu1 %v565_v3  ;;  %v275_v7 = vand.u32 2147483647, %v561_v4  ;;  %v276_v8 = vand.u32 2147483647, %v562_v5  ;;  %vm301_vm2 = vcmp.ge.f32.partialorder %v561_v4, 0.0  ;;  %vm302_vm3 = vcmp.ge.f32.partialorder %v562_v5, 0.0 }
  0x72   : > { %v283_v21 = vmax.f32 %v561_v4, 0.0  ;;  %v285_v22 = vmul.f32 %v565_v3, %v561_v4  ;;  %v284_v25 = vmax.f32 %v562_v5, 0.0  ;;  %v286_v26 = vmul.f32 %v566_v6, %v562_v5 }
  0x73   : > { %v277_v9 = vsub.f32 0.0, %v275_v7  ;;  %v278_v10 = vsub.f32 0.0, %v276_v8  ;;  %vm307_vm4 = vcmp.gt.f32.partialorder %v565_v3, 0.5  ;;  %vm308_vm5 = vcmp.gt.f32.partialorder %v566_v6, 0.5 }
  0x74   : > { %v287_v33 = vsub.f32 %v283_v21, %v285_v22  ;;  %v288_v35 = vsub.f32 %v284_v25, %v286_v26 }
  0x75   : > { %369 = vadd.xlane.f32.xlu1 %v566_v6  ;;  %v279_v11 = vmul.f32 1.442695, %v277_v9  ;;  %v281_v12 = vmul.f32 1.442695, %v278_v10 }
  0x76   : > { %v366_v58 = vld [vmem:[#allocation6] sm:$0x1]  ;;  %v336_v22 = vld [vmem:[#allocation4] sm:$0x1] }
  0x77   : > { %649 = vpow2.f32 %v279_v11 }
  0x78   : > { %651 = vpow2.f32 %v281_v12 }
  0x81   : > { %v650_v13 = vpop.eup %649 }
  0x82   : > { %v652_v14 = vpop.eup %651  ;;  %v289_v15 = vadd.f32 1.0, %v650_v13 }
  0x83   : > { %v290_v16 = vadd.f32 1.0, %v652_v14 }
  0x84   : > { %653 = vrcp.f32 %v289_v15 }
  0x85   : > { %655 = vrcp.f32 %v290_v16 }
  0x86   : > { %657 = vlog2.f32 %v290_v16 }
  0x87   : > { %659 = vlog2.f32 %v289_v15  ;;  %v352_v15 = vld [vmem:[#allocation5] sm:$0x1] }
  0x8e   : > { %v654_v18 = vpop.eup %653 }
  0x8f   : > { %v656_v19 = vpop.eup %655  ;;  %v303_v20 = vmul.f32 %v654_v18, %v650_v13 }
  0x90   : > { %v658_v23 = vpop.eup %657  ;;  %v304_v24 = vmul.f32 %v656_v19, %v652_v14 }
  0x91   : > { %v660_v27 = vpop.eup %659  ;;  %v305_v28 = vsel %vm301_vm2, %v654_v18, %v303_v20  ;;  %v294_v36 = vmul.f32 0.6931472, %v658_v23 }
  0x92   : > { %353 = vadd.xlane.f32.xlu0 %v305_v28  ;;  %v309_v29 = vsub.f32 1.0, %v305_v28  ;;  %v306_v30 = vsel %vm302_vm3, %v656_v19, %v304_v24  ;;  %v292_v34 = vmul.f32 0.6931472, %v660_v27  ;;  %v337_v40 = vmul.f32 %v565_v3, %v305_v28  ;;  %v321_v27 = vld [vmem:[#allocation2] sm:$0x1] }
  0x93   : > { %v310_v31 = vsub.f32 1.0, %v306_v30  ;;  %v338_v32 = vmul.f32 %v566_v6, %v306_v30  ;;  %v296_v44 = vadd.f32 %v294_v36, %v288_v35 }
  0x94   : > { %v311_v37 = vsel %vm307_vm4, %v305_v28, %v309_v29  ;;  %v295_v42 = vadd.f32 %v292_v34, %v287_v33 }
  0x95   : > { %341 = vadd.xlane.f32.xlu1 %v338_v32  ;;  %v312_v38 = vsel %vm308_vm5, %v306_v30, %v310_v31  ;;  %v313_v39 = vsub.f32 1.0, %v311_v37 }
  0x96   : > { %355 = vadd.xlane.f32.xlu0 %v306_v30  ;;  %v314_v41 = vsub.f32 1.0, %v312_v38  ;;  %v392_v38 = vld [vmem:[#allocation3] sm:$0x1] }
  0x97   : > { %v315_v43 = vmul.f32 %v313_v39, %v313_v39 }
  0x98   : > { %v316_v45 = vmul.f32 %v314_v41, %v314_v41  ;;  %v406_v41 = vstv (%p395_p11), %s405_s20 }
  0x99   : > { %v317_v46 = vmul.f32 0.25, %v315_v43  ;;  %v410_v43 = vstv (%p395_p11), %s548_s21 }
  0x9a   : > { %339 = vadd.xlane.f32.xlu0 %v337_v40  ;;  %v318_v47 = vmul.f32 0.25, %v316_v45  ;;  %v411_v45 = vmul.f32 (%p395_p11), 1.442695, %v410_v43 }
  0x9b   : > { %v319_v48 = vmul.f32 %v317_v46, %v295_v42  ;;  %v407_v42 = vmul.f32 (%p395_p11), 1.442695, %v406_v41 }
  0x9c   : > { %v320_v49 = vmul.f32 %v318_v47, %v296_v44  ;;  %v414_v44 = vstv (%p395_p11), %s549_s5 }
  0x9d   : > { %v415_v46 = vmul.f32 (%p395_p11), 1.442695, %v414_v44 }
  0x9e   : > { %324 = vadd.xlane.f32.xlu1 %v320_v49  ;;  %322 = vadd.xlane.f32.xlu0 %v319_v48 }
  0xfe   : > { %v368_v50 = vpop.xlane.xlu1 %367 }
 0x102   : > { %v370_v51 = vpop.xlane.xlu1 %369 }
 0x103   : > { %v371_v52 = vadd.f32 %v370_v51, %v368_v50 }
 0x105   : > { %v372_v53 = vrot.slane %v371_v52, 4 }
 0x107   : > { %v373_v54 = vadd.f32 %v372_v53, %v371_v52  ;;  %v418_v53 = vstv (%p395_p11), %s550_s7 }
 0x109   : > { %v374_v55 = vrot.slane %v373_v54, 2 }
 0x10b   : > { %v375_v56 = vadd.f32 %v374_v55, %v373_v54 }
 0x10d   : > { %v376_v57 = vrot.slane %v375_v56, 1 }
 0x10f   : > { %v377_v59 = vadd.f32 %v376_v57, %v375_v56 }
 0x111   : > { %v378_v60 = vadd.f32 %v377_v59, %v366_v58 }
 0x113   : > { %379 = vst.msk [vmem:[#allocation6] sm:$0x1] %vm263_vm1, %v378_v60 }
 0x11a   : > { %v387_v30 = vld [vmem:[#allocation6] sm:$0x1] }
 0x11f   : > { %v354_v61 = vpop.xlane.xlu0 %353 }
 0x122   : > { %v342_v0 = vpop.xlane.xlu1 %341 }
 0x123   : > { %v356_v62 = vpop.xlane.xlu0 %355 }
 0x124   : > { %v357_v63 = vadd.f32 %v356_v62, %v354_v61 }
 0x126   : > { %v358_v1 = vrot.slane %v357_v63, 4 }
 0x127   : > { %v340_v2 = vpop.xlane.xlu0 %339 }
 0x128   : > { %v359_v3 = vadd.f32 %v358_v1, %v357_v63  ;;  %v343_v4 = vadd.f32 %v342_v0, %v340_v2 }
 0x12a   : > { %v360_v5 = vrot.slane %v359_v3, 2  ;;  %v344_v6 = vrot.slane %v343_v4, 4 }
 0x12b   : > { %v325_v7 = vpop.xlane.xlu1 %324  ;;  %v323_v8 = vpop.xlane.xlu0 %322 }
 0x12c   : > { %v361_v9 = vadd.f32 %v360_v5, %v359_v3  ;;  %v345_v10 = vadd.f32 %v344_v6, %v343_v4  ;;  %v326_v11 = vadd.f32 %v325_v7, %v323_v8 }
 0x12e   : > { %v362_v12 = vrot.slane %v361_v9, 1  ;;  %v346_v13 = vrot.slane %v345_v10, 2  ;;  %v327_v14 = vrot.slane %v326_v11, 4 }
 0x130   : > { %v363_v16 = vadd.f32 %v362_v12, %v361_v9  ;;  %v347_v17 = vadd.f32 %v346_v13, %v345_v10  ;;  %v328_v18 = vadd.f32 %v327_v14, %v326_v11 }
 0x132   : > { %v364_v19 = vadd.f32 %v363_v16, %v352_v15  ;;  %v348_v20 = vrot.slane %v347_v17, 1  ;;  %v329_v21 = vrot.slane %v328_v18, 2 }
 0x134   : > { %365 = vst.msk [vmem:[#allocation5] sm:$0x1] %vm263_vm1, %v364_v19  ;;  %v349_v23 = vadd.f32 %v348_v20, %v347_v17  ;;  %v330_v24 = vadd.f32 %v329_v21, %v328_v18 }
 0x136   : > { %v350_v25 = vadd.f32 %v349_v23, %v336_v22  ;;  %v331_v26 = vrot.slane %v330_v24, 1 }
 0x138   : > { %351 = vst.msk [vmem:[#allocation4] sm:$0x1] %vm263_vm1, %v350_v25  ;;  %v332_v28 = vadd.f32 %v331_v26, %v330_v24 }
 0x13a   : > { %v333_v29 = vadd.f32 %v332_v28, %v321_v27 }
 0x13b   : > { %v386_v31 = vld [vmem:[#allocation5] sm:$0x1] }
 0x13c   : > { %v388_v32 = vadd.f32 %v387_v30, %v386_v31  ;;  %335 = vst.msk [vmem:[#allocation2] sm:$0x1] %vm263_vm1, %v333_v29 }
 0x13e   : > { %v389_v33 = vadd.f32 1e-05, %v388_v32 }
 0x13f   : > { %v383_v34 = vld [vmem:[#allocation4] sm:$0x1] }
 0x140   : > { %661 = vrcp.f32 %v389_v33  ;;  %v384_v35 = vmul.f32 2.0, %v383_v34 }
 0x141   : > { %663 = vpow2.f32 (%p395_p11), %v407_v42 }
 0x142   : > { %v385_v36 = vadd.f32 1e-05, %v384_v35  ;;  %665 = vpow2.f32 (%p395_p11), %v411_v45 }
 0x143   : > { %667 = vpow2.f32 (%p395_p11), %v415_v46  ;;  %v400_v48 = vld [vmem:[#allocation2] sm:$0x1] (%p395_p11) }
 0x144   : > { %v401_v50 = vmul.f32 (%p395_p11), 0.00024414063, %v400_v48 }
 0x149   : > { %399 = sbr.rel (!%p395_p11) target bundleno = 354 (0x162), region = 60 }
 0x14a   : > { %v662_v37 = vpop.eup %661 }
 0x14b   : > { %v391_v39 = vmul.f32 %v662_v37, %v385_v36  ;;  %v664_v52 = vpop.eup (%p395_p11), %663 }
 0x14c   : > { %v666_v54 = vpop.eup (%p395_p11), %665  ;;  %v419_v55 = vmul.f32 (%p395_p11), %v664_v52, %v401_v50 }
 0x14d   : > { %v393_v40 = vadd.f32 %v392_v38, %v391_v39  ;;  %v668_v56 = vpop.eup (%p395_p11), %667 }
 0x14e   : > { %v422_v58 = vmul.f32 (%p395_p11), %v668_v56, %v418_v53 }
 0x14f   : > { %394 = vst.msk [vmem:[#allocation3] sm:$0x1] %vm263_vm1, %v393_v40 }
 0x156   : > { %v402_v47 = vld [vmem:[#allocation3] sm:$0x1] }
 0x157   : > { %v403_v49 = vmul.f32 0.5, %v402_v47 }
 0x159   : > { %v404_v51 = vsub.f32 1.0, %v403_v49 }
 0x15b   : > { %v420_v57 = vmul.f32 %v666_v54, %v404_v51 }
 0x15d   : > { %v421_v59 = vadd.f32 %v420_v57, %v419_v55 }
 0x15f   : > { %v423_v60 = vadd.f32 %v422_v58, %v421_v59 }
 0x161   : > { %424 = vst.msk [vmem:[#allocation14] sm:$0x1] %vm263_vm1, %v423_v60 }
 0x162 PF: > { %p1060_p10 = scmp.eq.s32.totalorder %s532_s18, 1  ;;  %s839_s12 = smov [#allocation14]  }
 0x163   : > { %s432_s26 = sshll.u32 %s839_s12, 4  ;;  %s433_s26 = int_to_ptr.vmem [resolvable:$true] %s432_s26 }
 0x164   : > { %s742_s28 = scalar_lea.vmem %s433_s26, 16  ;;  %s748_s4 = scalar_lea.vmem %s433_s26, 32 }
 0x165   : > { %p743_p13 = scmp.ne.s32.totalorder %s433_s26, %s742_s28  ;;  %p749_p4 = scmp.lt.s32.totalorder %s433_s26, %s433_s26 }
 0x166   : > { %p750_p3 = scmp.lt.s32.totalorder %s748_s4, %s742_s28 }
 0x167   : > { %p744_p1 = pnand %p743_p13, %p1060_p10 }
 0x168   : > { %p751_p6 = por %p750_p3, %p749_p4 }
 0x169   : > { %p745_p2 = pneg %p744_p1 }
 0x16b   : > { %p752_p5 = pnand %p751_p6, %p745_p2 }
 0x16d   : > { %755 = shalt.err (!%p752_p5)
}
 0x16e   : > { %s756_s9 = scalar_lea.hbm %s1107_s3, 16 }
 0x16f   : > { %p757_p7 = scmp.ne.s32.totalorder %s1107_s3, %s756_s9  ;;  %p762_p0 = scmp.lt.u32.totalorder %s756_s9, %s1107_s3 }
 0x171   : > { %p758_p9 = pnand %p757_p7, %p1060_p10 }
 0x173   : > { %p759_p12 = pneg %p758_p9 }
 0x175   : > { %p764_p8 = pnand %p762_p0, %p759_p12 }
 0x177   : > { %767 = shalt.err (!%p764_p8)
}
 0x178   : > { %576 = dma.vmem_to_hbm [thread:$0]  (%p1060_p10), %s433_s26, 16, %s1107_s3, [#allocation9]  }
 0x179   : > { %805 = dma.done.wait (%p1060_p10), [#allocation9], 16  }
 0x17a   : > { %807 = vsyncadd (%p1060_p10), [#allocation9], 4294967280 }
 0x17b PF: > { %s21_s17 = sadd.s32 1, %s830_s17   ;;  %s1118_s12 = smov %s814_s13 }
 0x17c   : > { %p18_p11 = scmp.ge.s32.totalorder %s21_s17, 4   ;;  %s1119_s13 = smov %s818_s14 }
 0x17d   : > { %s1120_s14 = smov %s955_s30  ;;  %s1121_s15 = smov %s826_s16 }
 0x17e   : > { %s1122_s16 = smov %s1124_s24  ;;  %20 = sbr.rel (!%p18_p11) target bundleno = 8 (0x8), region = 103 }
 0x185   :  { %445 = vsyncpa [#allocation8], 1 }
 0x186   :  { %447 = vsyncpa [#allocation8 + $0x1], 1 }
 0x187   :  { %448 = vsyncpa [#allocation13], 1 }
 0x188   :  { %450 = vsyncpa [#allocation13 + $0x1], 1 }
 0x189   :  { %451 = vsyncpa [#allocation9], 1 }
 0x18a   :  { %453 = vsyncpa [#allocation9 + $0x1], 1 }
 0x18b   :  { %454 = vsyncpa [#allocation10], 1 }
 0x18c   :  { %456 = vsyncpa [#allocation10 + $0x1], 1 }

</bundles_post_ra>
